<compile_context>
chip_gen: v7x
topology: tpu7x:2x2x1
jax: 0.10.0
libtpu: 0.0.40
codegen_flags: <defaults>
</compile_context>

<pallas_src>
import functools

import jax
import jax.numpy as jnp
from jax.experimental import pallas as pl
from jax.experimental.pallas import tpu as pltpu

FEATURES = 4      # observation size (CartPole)
H1 = 256          # fc1 width
H2 = 128          # fc2 width
NHEAD = 8         # head rows computed (0,1 = action logits, 2 = value, rest pad)
OUT_ROWS = 3      # packed output rows: p0, p1, value


def _round_up(x, m):
    return (x + m - 1) // m * m


def policy_kernel(xt_ref, w1t_ref, w2ht_ref, biast_ref, out_ref):
    """Fused Policy forward for one (FEATURES, TB) batch tile (feature-major).

    Packed operands (all VMEM-resident, constant index_map):
      w1t_ref   : (256, 4)    fc1 weight, (out, in) layout
      w2ht_ref  : (128, 384)  cols [0:256]   = fc2 weight (out, in)
                              cols [256:384] = fused head weight (out, in);
                                rows 0..1 = action_head, row 2 = value_head,
                                rows 3..127 zero padding
      biast_ref : (256, 3)    col 0 = b1, col 1 rows[0:128] = b2,
                              col 2 rows[0:3] = (ba0, ba1, bv)
    Packed output:
      out_ref   : (3, TB)     row 0,1 = softmax probs, row 2 = state value
    """
    xt = xt_ref[...]                                            # (4, TB) f32

    b1 = biast_ref[:, 0:1]                                      # (256, 1)
    b2 = biast_ref[0:H2, 1:2]                                   # (128, 1)
    bh = biast_ref[0:NHEAD, 2:3]                                # (8, 1)

    # fc1 + leaky_relu(0.1)
    h1 = jnp.dot(w1t_ref[...], xt, preferred_element_type=jnp.float32) + b1
    h1 = jnp.maximum(h1, 0.1 * h1)                              # (256, TB)

    # fc2 + leaky_relu(0.1)
    h2 = jnp.dot(w2ht_ref[:, 0:H1], h1,
                 preferred_element_type=jnp.float32) + b2
    h2 = jnp.maximum(h2, 0.1 * h2)                              # (128, TB)

    # TODO(synk): nn.Dropout(p=0.2) is identity in eval mode; training-mode
    # stochastic masking (pltpu.prng_*) intentionally omitted.

    # Fused action_head + value_head: one (8,128)x(128,TB) MXU pass.
    heads = jnp.dot(w2ht_ref[0:NHEAD, H1:H1 + H2], h2,
                    preferred_element_type=jnp.float32) + bh    # (8, TB)
    l0 = heads[0:1, :]
    l1 = heads[1:2, :]
    val = heads[2:3, :]

    # 2-class softmax via one sigmoid (EUP exp, no cross-lane reduction);
    # p1 = 1 - p0 keeps the pair normalized and saves an exp.
    p0 = 1.0 / (1.0 + jnp.exp(l1 - l0))
    p1 = 1.0 - p0

    # Three narrow row stores into the VMEM output block (no iota/where).
    out_ref[0:1, :] = p0
    out_ref[1:2, :] = p1
    out_ref[2:3, :] = val


def _choose_tile(B, max_tile):
    """Pick (TB, Bp): batch tile and padded batch size.

    * big tiles amortize the ~0.35us per-grid-step overhead,
    * large batches get >= 2 grid steps so ("parallel",) shards the batch
      across both TensorCores on v7x,
    * multi-step grids use a 128-multiple tile so the (3, Bp)/(4, Bp) blocks
      stay lane-aligned.
    """
    TB = max(8, min(max_tile, _round_up(pl.cdiv(B, 2), 8)))
    Bp = _round_up(B, TB)
    if Bp // TB > 1 and TB % 128 != 0:
        TB = _round_up(TB, 128)
        Bp = _round_up(B, TB)
    return TB, Bp


@functools.partial(jax.jit, static_argnames=("max_tile",))
def policy_forward(x, w1t, w2ht, biast, *, max_tile=2048):
    """Returns (action_prob (B, 2), state_values (B, 1))."""
    B = x.shape[0]
    TB, Bp = _choose_tile(B, max_tile)

    xt = x.T                                                    # (4, B)
    if Bp != B:
        xt = jnp.pad(xt, ((0, 0), (0, Bp - B)))
    grid = (Bp // TB,)

    out = pl.pallas_call(
        policy_kernel,
        out_shape=jax.ShapeDtypeStruct((OUT_ROWS, Bp), jnp.float32),
        grid=grid,
        in_specs=[
            pl.BlockSpec((FEATURES, TB), lambda i: (0, i)),     # x tile
            pl.BlockSpec((H1, FEATURES), lambda i: (0, 0)),     # w1 (resident)
            pl.BlockSpec((H2, H1 + H2), lambda i: (0, 0)),      # w2 + head w
            pl.BlockSpec((H1, OUT_ROWS), lambda i: (0, 0)),     # packed biases
        ],
        out_specs=pl.BlockSpec((OUT_ROWS, TB), lambda i: (0, i)),
        compiler_params=pltpu.CompilerParams(
            dimension_semantics=("parallel",)),  # batch axis -> both TCs on v7x
    )(xt, w1t, w2ht, biast)

    action_prob = out[0:2, :B].T                                # (B, 2)
    state_values = out[2:3, :B].T                               # (B, 1)
    return action_prob, state_values


def init_params(key):
    """PyTorch nn.Linear-style init. Weights stored (in, out); biases (1, out)."""
    ks = jax.random.split(key, 8)

    def lin(kw, kb, fan_in, fan_out):
        bound = 1.0 / jnp.sqrt(jnp.float32(fan_in))
        w = jax.random.uniform(kw, (fan_in, fan_out), jnp.float32, -bound, bound)
        b = jax.random.uniform(kb, (1, fan_out), jnp.float32, -bound, bound)
        return w, b

    w1, b1 = lin(ks[0], ks[1], FEATURES, H1)
    w2, b2 = lin(ks[2], ks[3], H1, H2)
    wa, ba = lin(ks[4], ks[5], H2, 2)
    wv, bv = lin(ks[6], ks[7], H2, 1)
    return dict(w1=w1, b1=b1, w2=w2, b2=b2, wa=wa, ba=ba, wv=wv, bv=bv)


def pack_params(p):
    """Pack 8 parameter tensors into 3 kernel operands (fewer tiny DMAs)."""
    w1t = p["w1"].T                                             # (256, 4)
    w2t = p["w2"].T                                             # (128, 256)
    wht = jnp.zeros((H2, H2), jnp.float32)
    wht = wht.at[0:2, :].set(p["wa"].T)                         # action rows 0..1
    wht = wht.at[2:3, :].set(p["wv"].T)                         # value row 2
    w2ht = jnp.concatenate([w2t, wht], axis=1)                  # (128, 384)

    biast = jnp.zeros((H1, OUT_ROWS), jnp.float32)
    biast = biast.at[:, 0:1].set(p["b1"].T)                     # (256, 1)
    biast = biast.at[0:H2, 1:2].set(p["b2"].T)                  # (128, 1)
    biast = biast.at[0:2, 2:3].set(p["ba"].T)
    biast = biast.at[2:3, 2:3].set(p["bv"].T)
    return w1t, w2ht, biast


def reference_forward(x, p):
    def lrelu(v):
        return jnp.where(v >= 0, v, 0.1 * v)
    h1 = lrelu(x @ p["w1"] + p["b1"])
    h2 = lrelu(h1 @ p["w2"] + p["b2"])
    logits = h2 @ p["wa"] + p["ba"]
    prob = jax.nn.softmax(logits, axis=-1)
    val = h2 @ p["wv"] + p["bv"]
    return prob, val


if __name__ == "__main__":
    key = jax.random.PRNGKey(0)
    k_params, k_x, k_x2 = jax.random.split(key, 3)
    params = init_params(k_params)
    w1t, w2ht, biast = pack_params(params)

    # CartPole-like observations: batch of 8 states with 4 features each.
    x = jax.random.normal(k_x, (8, FEATURES), jnp.float32)
    action_prob, state_values = policy_forward(x, w1t, w2ht, biast)
    jax.block_until_ready((action_prob, state_values))

    ref_prob, ref_val = reference_forward(x, params)
    assert action_prob.shape == (8, 2) and state_values.shape == (8, 1)
    assert jnp.allclose(action_prob, ref_prob, atol=1e-5, rtol=1e-5)
    assert jnp.allclose(state_values, ref_val, atol=1e-5, rtol=1e-5)
    assert jnp.allclose(jnp.sum(action_prob, axis=-1), 1.0, atol=1e-6)

    # Larger batch: exercises the multi-step grid (2 TensorCores on v7x) and
    # the batch-padding path (B=384 -> TB=256, Bp=512, grid=(2,)).
    xb = jax.random.normal(k_x2, (384, FEATURES), jnp.float32)
    pb, vb = policy_forward(xb, w1t, w2ht, biast)
    jax.block_until_ready((pb, vb))
    ref_pb, ref_vb = reference_forward(xb, params)
    assert pb.shape == (384, 2) and vb.shape == (384, 1)
    assert jnp.allclose(pb, ref_pb, atol=1e-5, rtol=1e-5)
    assert jnp.allclose(vb, ref_vb, atol=1e-5, rtol=1e-5)

    print("KERNEL_OK")
</pallas_src>

<mosaic_0001>
module attributes {stable_mosaic.version = 11 : i64} {
  func.func @policy_kernel(%arg0: i32, %arg1: memref<4x8xf32, #tpu.memory_space<vmem>>, %arg2: memref<256x4xf32, #tpu.memory_space<vmem>>, %arg3: memref<128x384xf32, #tpu.memory_space<vmem>>, %arg4: memref<256x3xf32, #tpu.memory_space<vmem>>, %arg5: memref<3x8xf32, #tpu.memory_space<vmem>>) attributes {dimension_semantics = [#tpu.dimension_semantics<parallel>], iteration_bounds = array<i64: 1>, scalar_prefetch = 0 : i64, scratch_operands = 0 : i64, tpu.core_type = #tpu.core_type<tc>, window_params = [{transform_indices = @transform_0, window_bounds = array<i64: 4, 8>}, {pipeline_mode = #tpu.pipeline_mode<synchronous>, transform_indices = @transform_1, window_bounds = array<i64: 256, 4>}, {pipeline_mode = #tpu.pipeline_mode<synchronous>, transform_indices = @transform_2, window_bounds = array<i64: 128, 384>}, {pipeline_mode = #tpu.pipeline_mode<synchronous>, transform_indices = @transform_3, window_bounds = array<i64: 256, 3>}, {transform_indices = @transform_4, window_bounds = array<i64: 3, 8>}]} {
    %c0 = arith.constant 0 : index
    %c0_0 = arith.constant 0 : index
    %0 = vector.load %arg1[%c0, %c0_0] : memref<4x8xf32, #tpu.memory_space<vmem>>, vector<4x8xf32>
    %c0_1 = arith.constant 0 : index
    %c0_2 = arith.constant 0 : index
    %1 = vector.load %arg4[%c0_1, %c0_2] : memref<256x3xf32, #tpu.memory_space<vmem>>, vector<256x1xf32>
    %c0_3 = arith.constant 0 : index
    %c1 = arith.constant 1 : index
    %2 = vector.load %arg4[%c0_3, %c1] : memref<256x3xf32, #tpu.memory_space<vmem>>, vector<128x1xf32>
    %c0_4 = arith.constant 0 : index
    %c2 = arith.constant 2 : index
    %3 = vector.load %arg4[%c0_4, %c2] : memref<256x3xf32, #tpu.memory_space<vmem>>, vector<8x1xf32>
    %c0_5 = arith.constant 0 : index
    %c0_6 = arith.constant 0 : index
    %4 = vector.load %arg2[%c0_5, %c0_6] : memref<256x4xf32, #tpu.memory_space<vmem>>, vector<256x4xf32>
    %cst = arith.constant dense<0.000000e+00> : vector<256x8xf32>
    %5 = tpu.matmul %4, %0, %cst {dimension_numbers = #tpu.dot_dimension_numbers<[1], [0], [0], [1], [0, 0, 1, 1], [], []>} : vector<256x4xf32>, vector<4x8xf32>, vector<256x8xf32> -> vector<256x8xf32>
    %6 = vector.broadcast %1 : vector<256x1xf32> to vector<256x8xf32>
    %7 = arith.addf %5, %6 : vector<256x8xf32>
    %cst_7 = arith.constant 1.000000e-01 : f32
    %8 = vector.broadcast %cst_7 : f32 to vector<256x8xf32>
    %9 = arith.mulf %8, %7 : vector<256x8xf32>
    %10 = arith.maximumf %7, %9 : vector<256x8xf32>
    %c0_8 = arith.constant 0 : index
    %c0_9 = arith.constant 0 : index
    %11 = vector.load %arg3[%c0_8, %c0_9] : memref<128x384xf32, #tpu.memory_space<vmem>>, vector<128x256xf32>
    %cst_10 = arith.constant dense<0.000000e+00> : vector<128x8xf32>
    %12 = tpu.matmul %11, %10, %cst_10 {dimension_numbers = #tpu.dot_dimension_numbers<[1], [0], [0], [1], [0, 0, 1, 1], [], []>} : vector<128x256xf32>, vector<256x8xf32>, vector<128x8xf32> -> vector<128x8xf32>
    %13 = vector.broadcast %2 : vector<128x1xf32> to vector<128x8xf32>
    %14 = arith.addf %12, %13 : vector<128x8xf32>
    %cst_11 = arith.constant 1.000000e-01 : f32
    %15 = vector.broadcast %cst_11 : f32 to vector<128x8xf32>
    %16 = arith.mulf %15, %14 : vector<128x8xf32>
    %17 = arith.maximumf %14, %16 : vector<128x8xf32>
    %c0_12 = arith.constant 0 : index
    %c256 = arith.constant 256 : index
    %18 = vector.load %arg3[%c0_12, %c256] : memref<128x384xf32, #tpu.memory_space<vmem>>, vector<8x128xf32>
    %cst_13 = arith.constant dense<0.000000e+00> : vector<8x8xf32>
    %19 = tpu.matmul %18, %17, %cst_13 {dimension_numbers = #tpu.dot_dimension_numbers<[1], [0], [0], [1], [0, 0, 1, 1], [], []>} : vector<8x128xf32>, vector<128x8xf32>, vector<8x8xf32> -> vector<8x8xf32>
    %20 = vector.broadcast %3 : vector<8x1xf32> to vector<8x8xf32>
    %21 = arith.addf %19, %20 : vector<8x8xf32>
    %22 = vector.extract_strided_slice %21 {offsets = [0, 0], sizes = [1, 8], strides = [1, 1]} : vector<8x8xf32> to vector<1x8xf32>
    %23 = vector.extract_strided_slice %21 {offsets = [1, 0], sizes = [1, 8], strides = [1, 1]} : vector<8x8xf32> to vector<1x8xf32>
    %24 = vector.extract_strided_slice %21 {offsets = [2, 0], sizes = [1, 8], strides = [1, 1]} : vector<8x8xf32> to vector<1x8xf32>
    %25 = arith.subf %23, %22 : vector<1x8xf32>
    %26 = math.exp %25 : vector<1x8xf32>
    %cst_14 = arith.constant 1.000000e+00 : f32
    %27 = vector.broadcast %cst_14 : f32 to vector<1x8xf32>
    %28 = arith.addf %27, %26 : vector<1x8xf32>
    %cst_15 = arith.constant 1.000000e+00 : f32
    %29 = vector.broadcast %cst_15 : f32 to vector<1x8xf32>
    %30 = arith.divf %29, %28 : vector<1x8xf32>
    %cst_16 = arith.constant 1.000000e+00 : f32
    %31 = vector.broadcast %cst_16 : f32 to vector<1x8xf32>
    %32 = arith.subf %31, %30 : vector<1x8xf32>
    %c0_17 = arith.constant 0 : index
    %c0_18 = arith.constant 0 : index
    %33 = vector.load %arg5[%c0_17, %c0_18] : memref<3x8xf32, #tpu.memory_space<vmem>>, vector<1x8xf32>
    tpu.vector_store %arg5[%c0_17, %c0_18], %30 {strides = array<i32>} : memref<3x8xf32, #tpu.memory_space<vmem>>, vector<1x8xf32>,
    %c1_19 = arith.constant 1 : index
    %c0_20 = arith.constant 0 : index
    %34 = vector.load %arg5[%c1_19, %c0_20] : memref<3x8xf32, #tpu.memory_space<vmem>>, vector<1x8xf32>
    tpu.vector_store %arg5[%c1_19, %c0_20], %32 {strides = array<i32>} : memref<3x8xf32, #tpu.memory_space<vmem>>, vector<1x8xf32>,
    %c2_21 = arith.constant 2 : index
    %c0_22 = arith.constant 0 : index
    %35 = vector.load %arg5[%c2_21, %c0_22] : memref<3x8xf32, #tpu.memory_space<vmem>>, vector<1x8xf32>
    tpu.vector_store %arg5[%c2_21, %c0_22], %24 {strides = array<i32>} : memref<3x8xf32, #tpu.memory_space<vmem>>, vector<1x8xf32>,
    return
  }
  func.func @transform_0(%arg0: i32) -> (i32, i32) {
    %c0_i32 = arith.constant 0 : i32
    %c0_i32_0 = arith.constant 0 : i32
    return %c0_i32, %arg0 : i32, i32
  }
  func.func @transform_1(%arg0: i32) -> (i32, i32) {
    %c0_i32 = arith.constant 0 : i32
    %c0_i32_0 = arith.constant 0 : i32
    %c0_i32_1 = arith.constant 0 : i32
    return %c0_i32, %c0_i32_0 : i32, i32
  }
  func.func @transform_2(%arg0: i32) -> (i32, i32) {
    %c0_i32 = arith.constant 0 : i32
    %c0_i32_0 = arith.constant 0 : i32
    %c0_i32_1 = arith.constant 0 : i32
    return %c0_i32, %c0_i32_0 : i32, i32
  }
  func.func @transform_3(%arg0: i32) -> (i32, i32) {
    %c0_i32 = arith.constant 0 : i32
    %c0_i32_0 = arith.constant 0 : i32
    %c0_i32_1 = arith.constant 0 : i32
    return %c0_i32, %c0_i32_0 : i32, i32
  }
  func.func @transform_4(%arg0: i32) -> (i32, i32) {
    %c0_i32 = arith.constant 0 : i32
    %c0_i32_0 = arith.constant 0 : i32
    return %c0_i32, %arg0 : i32, i32
  }
}

</mosaic_0001>

<bundles_post_ra>
// kernel: policy_forward.1
= control target key start
LH: loop header
LB: loop body
LE: loop exit
PB: predicated region body
PF: predicated region fallthrough
CT: control target
= control target key end

     0   :  { %vm339_vm0 = vcmask 1043456   ;;  %vm242_vm1 = vcmask 31744   ;;  %v1319_v3 = vmov 0   ;;  %vm1322_vm2 = vmmov 0   ;;  %s1830_s0 = inlined_call_operand.vmem [shape: f32[4,8], index: 0, kind: input, shape index: {}]   ;;  %s1831_s1 = inlined_call_operand.vmem [shape: f32[256,4], index: 1, kind: input, shape index: {}]   ;;  %s1832_s3 = inlined_call_operand.vmem [shape: f32[256,3], index: 3, kind: input, shape index: {}]   ;;  %s1833_s2 = inlined_call_operand.vmem [shape: f32[128,384], index: 2, kind: input, shape index: {}]   ;;  %s1834_s4 = inlined_call_operand.vmem [shape: f32[3,8], index: 4, kind: output, shape index: {}]  }
   0x1   :  { %v17_v0 = vld [vmem:[%s1830_s0] sm:$0xf]  ;;  %v51_v2 = vld [vmem:[%s1831_s1 + $0x8] sm:$0xff]  ;;  %1310 = vset.pattern.permute.xlu1 %v1319_v3  ;;  %1309 = vset.pattern.permute.xlu0 %v1319_v3  ;;  %v52_v4 = vld [vmem:[%s1831_s1 + $0x10] sm:$0xff]  ;;  %vm993_vm3 = vcmask 59394   ;;  %vm990_vm4 = vcmask 58369  }
   0x2   :  { %v50_v1 = vld [vmem:[%s1831_s1] sm:$0xff]  ;;  %1162 = vmatprep.subr.msk.mxu0 %vm339_vm0, %v17_v0  ;;  %v53_v5 = vld [vmem:[%s1831_s1 + $0x18] sm:$0xff]  ;;  %v35_v9 = vld [vmem:[%s1832_s3 + $0x88] sm:$0xff] }
   0x3   :  { %1164 = vmatprep.mubr.msk.f32.mxu0 %vm242_vm1, %v50_v1  ;;  %1163 = vmatpush3.msk.msra.mxu0 %vm339_vm0, %v17_v0  ;;  %v54_v6 = vld [vmem:[%s1831_s1 + $0x20] sm:$0xff]  ;;  %v1387_v10 = vld [vmem:[%s1832_s3 + $0x8] sm:$0xff]  ;;  %v56_v12 = vld [vmem:[%s1831_s1 + $0x30] sm:$0xff] }
   0x4   :  { %1165 = vmatmul.mubr.msk.f32.vlgmr.msra.gmra.mrb[0].mxu0 %vm242_vm1, %v51_v2  ;;  %v34_v7 = vld [vmem:[%s1832_s3 + $0x80] sm:$0xff]  ;;  %v55_v11 = vld [vmem:[%s1831_s1 + $0x28] sm:$0xff]  ;;  %v36_v13 = vld [vmem:[%s1832_s3 + $0x90] sm:$0xff] }
   0x5   :  { %1167 = vmatprep.mubr.msk.f32.mxu0 %vm242_vm1, %v52_v4  ;;  %v1377_v8 = vld [vmem:[%s1832_s3] sm:$0xff]  ;;  %164 = vperm.xlu0 %1309, %v34_v7   ;;  %v37_v14 = vld [vmem:[%s1832_s3 + $0x98] sm:$0xff]  ;;  %v1415_v17 = vld [vmem:[%s1832_s3 + $0x10] sm:$0xff] }
   0x6   :  { %84 = vperm.xlu1 %1310, %v1377_v8   ;;  %v57_v15 = vld [vmem:[%s1831_s1 + $0x38] sm:$0xff]  ;;  %v58_v16 = vld [vmem:[%s1831_s1 + $0x40] sm:$0xff]  ;;  %v59_v19 = vld [vmem:[%s1831_s1 + $0x48] sm:$0xff] }
   0x7   :  { %v1420_v18 = vld [vmem:[%s1832_s3 + $0x18] sm:$0xff]  ;;  %v60_v20 = vld [vmem:[%s1831_s1 + $0x50] sm:$0xff]  ;;  %v38_v21 = vld [vmem:[%s1832_s3 + $0xa0] sm:$0xff] }
   0x8   :  { %1168 = vmatmul.mubr.msk.f32.gmra.mrb[2].mxu0 %vm242_vm1, %v53_v5  ;;  %v39_v22 = vld [vmem:[%s1832_s3 + $0xa8] sm:$0xff]  ;;  %v61_v23 = vld [vmem:[%s1831_s1 + $0x58] sm:$0xff]  ;;  %v62_v24 = vld [vmem:[%s1831_s1 + $0x60] sm:$0xff] }
   0x9   :  { %1170 = vmatprep.mubr.msk.f32.mxu0 %vm242_vm1, %v54_v6  ;;  %169 = vperm.xlu0 %1309, %v35_v9   ;;  %v1449_v25 = vld [vmem:[%s1832_s3 + $0x20] sm:$0xff]  ;;  %v1454_v26 = vld [vmem:[%s1832_s3 + $0x28] sm:$0xff]  ;;  %v64_v28 = vld [vmem:[%s1831_s1 + $0x70] sm:$0xff] }
   0xa   :  { %89 = vperm.xlu1 %1310, %v1387_v10   ;;  %v63_v27 = vld [vmem:[%s1831_s1 + $0x68] sm:$0xff]  ;;  %v40_v29 = vld [vmem:[%s1832_s3 + $0xb0] sm:$0xff]  ;;  %v41_v30 = vld [vmem:[%s1832_s3 + $0xb8] sm:$0xff] }
   0xb   :  { %v65_v31 = vld [vmem:[%s1831_s1 + $0x78] sm:$0xff]  ;;  %v66_v32 = vld [vmem:[%s1831_s1 + $0x80] sm:$0xff]  ;;  %v1483_v33 = vld [vmem:[%s1832_s3 + $0x30] sm:$0xff] }
   0xc   :  { %1171 = vmatmul.mubr.msk.f32.gmra.mrb[4].mxu0 %vm242_vm1, %v55_v11  ;;  %v1488_v34 = vld [vmem:[%s1832_s3 + $0x38] sm:$0xff]  ;;  %v67_v35 = vld [vmem:[%s1831_s1 + $0x88] sm:$0xff]  ;;  %v68_v36 = vld [vmem:[%s1831_s1 + $0x90] sm:$0xff] }
   0xd   :  { %1173 = vmatprep.mubr.msk.f32.mxu0 %vm242_vm1, %v56_v12  ;;  %174 = vperm.xlu0 %1309, %v36_v13   ;;  %v42_v37 = vld [vmem:[%s1832_s3 + $0xc0] sm:$0xff]  ;;  %v43_v38 = vld [vmem:[%s1832_s3 + $0xc8] sm:$0xff]  ;;  %v69_v39 = vld [vmem:[%s1831_s1 + $0x98] sm:$0xff] }
   0xe   :  { %179 = vperm.xlu1 %1310, %v37_v14   ;;  %v70_v40 = vld [vmem:[%s1831_s1 + $0xa0] sm:$0xff]  ;;  %v1522_v42 = vld [vmem:[%s1832_s3 + $0x48] sm:$0xff]  ;;  %v72_v44 = vld [vmem:[%s1831_s1 + $0xb0] sm:$0xff] }
   0xf   :  { %v1517_v41 = vld [vmem:[%s1832_s3 + $0x40] sm:$0xff]  ;;  %v71_v43 = vld [vmem:[%s1831_s1 + $0xa8] sm:$0xff]  ;;  %v44_v45 = vld [vmem:[%s1832_s3 + $0xd0] sm:$0xff] }
  0x10   :  { %1174 = vmatmul.mubr.msk.f32.gmra.mrb[6].mxu0 %vm242_vm1, %v57_v15  ;;  %v45_v46 = vld [vmem:[%s1832_s3 + $0xd8] sm:$0xff]  ;;  %v74_v48 = vld [vmem:[%s1831_s1 + $0xc0] sm:$0xff]  ;;  %v1551_v49 = vld [vmem:[%s1832_s3 + $0x50] sm:$0xff] }
  0x11   :  { %1176 = vmatprep.mubr.msk.f32.mxu0 %vm242_vm1, %v58_v16  ;;  %94 = vperm.xlu0 %1309, %v1415_v17   ;;  %v73_v47 = vld [vmem:[%s1831_s1 + $0xb8] sm:$0xff]  ;;  %v75_v51 = vld [vmem:[%s1831_s1 + $0xc8] sm:$0xff]  ;;  %v76_v52 = vld [vmem:[%s1831_s1 + $0xd0] sm:$0xff] }
  0x12   :  { %99 = vperm.xlu1 %1310, %v1420_v18   ;;  %v1556_v50 = vld [vmem:[%s1832_s3 + $0x58] sm:$0xff]  ;;  %v46_v53 = vld [vmem:[%s1832_s3 + $0xe0] sm:$0xff]  ;;  %v47_v54 = vld [vmem:[%s1832_s3 + $0xe8] sm:$0xff] }
  0x13   :  { %v77_v55 = vld [vmem:[%s1831_s1 + $0xd8] sm:$0xff]  ;;  %v78_v56 = vld [vmem:[%s1831_s1 + $0xe0] sm:$0xff]  ;;  %v1590_v58 = vld [vmem:[%s1832_s3 + $0x68] sm:$0xff] }
  0x14   :  { %1177 = vmatmul.mubr.msk.f32.gmra.mrb[8].mxu0 %vm242_vm1, %v59_v19  ;;  %v1585_v57 = vld [vmem:[%s1832_s3 + $0x60] sm:$0xff]  ;;  %v79_v59 = vld [vmem:[%s1831_s1 + $0xe8] sm:$0xff]  ;;  %v80_v60 = vld [vmem:[%s1831_s1 + $0xf0] sm:$0xff] }
  0x15   :  { %1179 = vmatprep.mubr.msk.f32.mxu0 %vm242_vm1, %v60_v20  ;;  %184 = vperm.xlu0 %1309, %v38_v21   ;;  %v48_v61 = vld [vmem:[%s1832_s3 + $0xf0] sm:$0xff]  ;;  %v49_v62 = vld [vmem:[%s1832_s3 + $0xf8] sm:$0xff]  ;;  %v633_v5 = vld [vmem:[%s1833_s2 + $0x8] sm:$0xff] }
  0x16   :  { %189 = vperm.xlu1 %1310, %v39_v22   ;;  %v81_v63 = vld [vmem:[%s1831_s1 + $0xf8] sm:$0xff]  ;;  %v1616_v0 = vld [vmem:[%s1832_s3 + $0x70] sm:$0xff]  ;;  %792 = vmatprep.mubr.f32.mxu1 %v633_v5 }
  0x17   :  { %v1621_v1 = vld [vmem:[%s1832_s3 + $0x78] sm:$0xff] }
  0x18   :  { %1180 = vmatmul.mubr.msk.f32.gmra.mrb[10].mxu0 %vm242_vm1, %v61_v23 }
  0x19   :  { %1182 = vmatprep.mubr.msk.f32.mxu0 %vm242_vm1, %v62_v24  ;;  %104 = vperm.xlu0 %1309, %v1449_v25  }
  0x1a   :  { %109 = vperm.xlu1 %1310, %v1454_v26  }
  0x1c   :  { %1183 = vmatmul.mubr.msk.f32.gmra.mrb[12].mxu0 %vm242_vm1, %v63_v27 }
  0x1d   :  { %1185 = vmatprep.mubr.msk.f32.mxu0 %vm242_vm1, %v64_v28  ;;  %194 = vperm.xlu0 %1309, %v40_v29  }
  0x1e   :  { %199 = vperm.xlu1 %1310, %v41_v30  }
  0x20   :  { %1186 = vmatmul.mubr.msk.f32.gmra.mrb[14].mxu0 %vm242_vm1, %v65_v31 }
  0x21   :  { %1188 = vmatprep.mubr.msk.f32.mxu0 %vm242_vm1, %v66_v32  ;;  %114 = vperm.xlu0 %1309, %v1483_v33  }
  0x22   :  { %119 = vperm.xlu1 %1310, %v1488_v34  }
  0x24   :  { %1189 = vmatmul.mubr.msk.f32.gmra.mrb[16].mxu0 %vm242_vm1, %v67_v35 }
  0x25   :  { %1191 = vmatprep.mubr.msk.f32.mxu0 %vm242_vm1, %v68_v36  ;;  %204 = vperm.xlu0 %1309, %v42_v37  }
  0x26   :  { %209 = vperm.xlu1 %1310, %v43_v38  }
  0x28   :  { %1192 = vmatmul.mubr.msk.f32.gmra.mrb[18].mxu0 %vm242_vm1, %v69_v39 }
  0x29   :  { %1194 = vmatprep.mubr.msk.f32.mxu0 %vm242_vm1, %v70_v40  ;;  %124 = vperm.xlu0 %1309, %v1517_v41  }
  0x2a   :  { %129 = vperm.xlu1 %1310, %v1522_v42  }
  0x2c   :  { %1195 = vmatmul.mubr.msk.f32.gmra.mrb[20].mxu0 %vm242_vm1, %v71_v43 }
  0x2d   :  { %1197 = vmatprep.mubr.msk.f32.mxu0 %vm242_vm1, %v72_v44  ;;  %214 = vperm.xlu0 %1309, %v44_v45  }
  0x2e   :  { %219 = vperm.xlu1 %1310, %v45_v46  }
  0x30   :  { %1198 = vmatmul.mubr.msk.f32.gmra.mrb[22].mxu0 %vm242_vm1, %v73_v47 }
  0x31   :  { %1200 = vmatprep.mubr.msk.f32.mxu0 %vm242_vm1, %v74_v48  ;;  %134 = vperm.xlu0 %1309, %v1551_v49  }
  0x32   :  { %139 = vperm.xlu1 %1310, %v1556_v50  }
  0x34   :  { %1201 = vmatmul.mubr.msk.f32.gmra.mrb[24].mxu0 %vm242_vm1, %v75_v51 }
  0x35   :  { %1203 = vmatprep.mubr.msk.f32.mxu0 %vm242_vm1, %v76_v52  ;;  %224 = vperm.xlu0 %1309, %v46_v53   ;;  %v1320_v52 = vmov 1  }
  0x36   :  { %229 = vperm.xlu1 %1310, %v47_v54  }
  0x38   :  { %1204 = vmatmul.mubr.msk.f32.gmra.mrb[26].mxu0 %vm242_vm1, %v77_v55 }
  0x39   :  { %1206 = vmatprep.mubr.msk.f32.mxu0 %vm242_vm1, %v78_v56  ;;  %144 = vperm.xlu0 %1309, %v1585_v57  }
  0x3a   :  { %149 = vperm.xlu1 %1310, %v1590_v58  }
  0x3c   :  { %1207 = vmatmul.mubr.msk.f32.gmra.mrb[28].mxu0 %vm242_vm1, %v79_v59 }
  0x3d   :  { %1209 = vmatprep.mubr.msk.f32.mxu0 %vm242_vm1, %v80_v60  ;;  %234 = vperm.xlu0 %1309, %v48_v61  }
  0x3e   :  { %239 = vperm.xlu1 %1310, %v49_v62  }
  0x40   :  { %1210 = vmatmul.mubr.msk.f32.gmra.mrb[30].mxu0 %vm242_vm1, %v81_v63 }
  0x41   :  { %154 = vperm.xlu0 %1309, %v1616_v0  }
  0x42   :  { %159 = vperm.xlu1 %1310, %v1621_v1  }
  0x45   :  { %1311 = vset.pattern.permute.xlu0 %v1320_v52 }
  0x46   :  { %1312 = vset.pattern.permute.xlu1 %v1320_v52  ;;  %665 = vperm.xlu0 %1311, %v1377_v8  }
  0x47   :  { %669 = vperm.xlu1 %1312, %v1387_v10  }
  0x4a   :  { %677 = vperm.xlu0 %1311, %v1420_v18  }
  0x4b   :  { %673 = vperm.xlu1 %1312, %v1415_v17  }
  0x4e   :  { %685 = vperm.xlu0 %1311, %v1454_v26  }
  0x4f   :  { %681 = vperm.xlu1 %1312, %v1449_v25  }
  0x52   :  { %693 = vperm.xlu0 %1311, %v1488_v34  }
  0x53   :  { %689 = vperm.xlu1 %1312, %v1483_v33  }
  0x56   :  { %701 = vperm.xlu0 %1311, %v1522_v42  }
  0x57   :  { %697 = vperm.xlu1 %1312, %v1517_v41  }
  0x5a   :  { %709 = vperm.xlu0 %1311, %v1556_v50  }
  0x5b   :  { %705 = vperm.xlu1 %1312, %v1551_v49  }
  0x5e   :  { %717 = vperm.xlu0 %1311, %v1590_v58  }
  0x5f   :  { %713 = vperm.xlu1 %1312, %v1585_v57  }
  0x62   :  { %725 = vperm.xlu0 %1311, %v1621_v1  }
  0x63   :  { %721 = vperm.xlu1 %1312, %v1616_v0  }
  0x84   :  { %v1625_v3 = vpop.permute.xlu0 %164 }
  0x85   :  { %v85_v2 = vpop.permute.xlu1 %84 }
  0x88   :  { %v1630_v6 = vpop.permute.xlu0 %169 }
  0x89   :  { %v90_v4 = vpop.permute.xlu1 %89 }
  0x8c   :  { %v1634_v9 = vpop.permute.xlu0 %174 }
  0x8d   :  { %v1632_v7 = vpop.permute.xlu1 %179 }
  0x90   :  { %v95_v12 = vpop.permute.xlu0 %94 }
  0x91   :  { %v100_v11 = vpop.permute.xlu1 %99 }
  0x94   :  { %v1638_v14 = vpop.permute.xlu0 %184 }
  0x95   :  { %v1636_v13 = vpop.permute.xlu1 %189 }
  0x98   :  { %v105_v16 = vpop.permute.xlu0 %104 }
  0x99   :  { %v110_v15 = vpop.permute.xlu1 %109 }
  0x9c   :  { %v1642_v20 = vpop.permute.xlu0 %194 }
  0x9d   :  { %v1640_v19 = vpop.permute.xlu1 %199 }
  0xa0   :  { %v115_v22 = vpop.permute.xlu0 %114 }
  0xa1   :  { %v120_v21 = vpop.permute.xlu1 %119 }
  0xa4   :  { %v1646_v24 = vpop.permute.xlu0 %204 }
  0xa5   :  { %v1644_v23 = vpop.permute.xlu1 %209 }
  0xa8   :  { %v125_v28 = vpop.permute.xlu0 %124 }
  0xa9   :  { %v130_v27 = vpop.permute.xlu1 %129 }
  0xac   :  { %v1650_v30 = vpop.permute.xlu0 %214 }
  0xad   :  { %v1648_v29 = vpop.permute.xlu1 %219 }
  0xb0   :  { %v135_v43 = vpop.permute.xlu0 %134 }
  0xb1   :  { %v140_v38 = vpop.permute.xlu1 %139 }
  0xb5   :  { %v1656_v61 = vpop.permute.xlu1 %229 }
  0xd7   :  { %v1166_v31 = vpop.f32.mrb[0].mxu0 }
  0xd8   :  { %v415_v32 = vadd.f32 %v1166_v31, %v90_v4  ;;  %v409_v35 = vpop.f32.mrb[1].mxu0 }
  0xd9   :  { %v410_v36 = vadd.f32 %v409_v35, %v85_v2  ;;  %v1658_v2 = vpop.permute.xlu0 %224 }
  0xda   :  { %v569_v37 = vmul.f32 0.1, %v415_v32 }
  0xdb   :  { %v568_v39 = vmul.f32 0.1, %v410_v36  ;;  %v1169_v40 = vpop.f32.mrb[2].mxu0 }
  0xdc   :  { %v601_v44 = vmax.f32 %v415_v32, %v569_v37  ;;  %v425_v45 = vadd.f32 %v1169_v40, %v100_v11  ;;  %v419_v46 = vpop.f32.mrb[3].mxu0  ;;  %v150_v37 = vpop.permute.xlu1 %149 }
  0xdd   :  { %v600_v47 = vmax.f32 %v410_v36, %v568_v39  ;;  %v420_v48 = vadd.f32 %v419_v46, %v95_v12 }
  0xde   :  { %v571_v51 = vmul.f32 0.1, %v425_v45 }
  0xdf   :  { %v570_v53 = vmul.f32 0.1, %v420_v48  ;;  %v1172_v54 = vpop.f32.mrb[4].mxu0  ;;  %v1652_v55 = vpack.c.bf16 %v601_v44, %v600_v47  ;;  %v145_v44 = vpop.permute.xlu0 %144 }
  0xe0   :  { %v603_v56 = vmax.f32 %v425_v45, %v571_v51  ;;  %v435_v59 = vadd.f32 %v1172_v54, %v110_v15  ;;  %v429_v60 = vpop.f32.mrb[5].mxu0  ;;  %v1672_v54 = vpop.permute.xlu1 %239 }
  0xe1   :  { %v602_v62 = vmax.f32 %v420_v48, %v570_v53  ;;  %v430_v63 = vadd.f32 %v429_v60, %v105_v16 }
  0xe2   :  { %v573_v4 = vmul.f32 0.1, %v435_v59 }
  0xe3   :  { %v572_v5 = vmul.f32 0.1, %v430_v63  ;;  %v1175_v11 = vpop.f32.mrb[6].mxu0  ;;  %v1660_v12 = vpack.c.bf16 %v603_v56, %v602_v62 }
  0xe4   :  { %v605_v31 = vmax.f32 %v435_v59, %v573_v4  ;;  %v445_v10 = vadd.f32 %v1175_v11, %v120_v21  ;;  %v439_v32 = vpop.f32.mrb[7].mxu0  ;;  %v160_v11 = vpop.permute.xlu1 %159 }
  0xe5   :  { %v604_v15 = vmax.f32 %v430_v63, %v572_v5  ;;  %v440_v35 = vadd.f32 %v439_v32, %v115_v22 }
  0xe6   :  { %v575_v36 = vmul.f32 0.1, %v445_v10 }
  0xe7   :  { %v574_v39 = vmul.f32 0.1, %v440_v35  ;;  %v1178_v16 = vpop.f32.mrb[8].mxu0  ;;  %v1664_v40 = vpack.c.bf16 %v605_v31, %v604_v15 }
  0xe8   :  { %v607_v45 = vmax.f32 %v445_v10, %v575_v36  ;;  %v455_v18 = vadd.f32 %v1178_v16, %v130_v27  ;;  %v449_v46 = vpop.f32.mrb[9].mxu0  ;;  %v1674_v27 = vpop.permute.xlu0 %234 }
  0xe9   :  { %v606_v17 = vmax.f32 %v440_v35, %v574_v39  ;;  %v450_v47 = vadd.f32 %v449_v46, %v125_v28 }
  0xea   :  { %v577_v21 = vmul.f32 0.1, %v455_v18 }
  0xeb   :  { %v576_v48 = vmul.f32 0.1, %v450_v47  ;;  %v1181_v51 = vpop.f32.mrb[10].mxu0  ;;  %v1668_v22 = vpack.c.bf16 %v607_v45, %v606_v17 }
  0xec   :  { %v609_v52 = vmax.f32 %v455_v18, %v577_v21  ;;  %v465_v53 = vadd.f32 %v1181_v51, %v140_v38  ;;  %v459_v26 = vpop.f32.mrb[11].mxu0  ;;  %v155_v32 = vpop.permute.xlu0 %154 }
  0xed   :  { %v608_v25 = vmax.f32 %v450_v47, %v576_v48  ;;  %v460_v56 = vadd.f32 %v459_v26, %v135_v43 }
  0xee   :  { %v579_v59 = vmul.f32 0.1, %v465_v53 }
  0xef   :  { %v578_v28 = vmul.f32 0.1, %v460_v56  ;;  %v1184_v60 = vpop.f32.mrb[12].mxu0  ;;  %v1676_v62 = vpack.c.bf16 %v609_v52, %v608_v25 }
  0xf0   :  { %v611_v34 = vmax.f32 %v465_v53, %v579_v59  ;;  %v475_v33 = vadd.f32 %v1184_v60, %v150_v37  ;;  %v469_v63 = vpop.f32.mrb[13].mxu0 }
  0xf1   :  { %v610_v38 = vmax.f32 %v460_v56, %v578_v28  ;;  %v470_v4 = vadd.f32 %v469_v63, %v145_v44 }
  0xf2   :  { %v581_v5 = vmul.f32 0.1, %v475_v33 }
  0xf3   :  { %v580_v31 = vmul.f32 0.1, %v470_v4  ;;  %v1187_v43 = vpop.f32.mrb[14].mxu0  ;;  %v1680_v10 = vpack.c.bf16 %v611_v34, %v610_v38 }
  0xf4   :  { %v613_v15 = vmax.f32 %v475_v33, %v581_v5  ;;  %v485_v42 = vadd.f32 %v1187_v43, %v160_v11  ;;  %v479_v35 = vpop.f32.mrb[15].mxu0 }
  0xf5   :  { %v612_v41 = vmax.f32 %v470_v4, %v580_v31  ;;  %v480_v36 = vadd.f32 %v479_v35, %v155_v32 }
  0xf6   :  { %v583_v37 = vmul.f32 0.1, %v485_v42 }
  0xf7   :  { %v582_v39 = vmul.f32 0.1, %v480_v36  ;;  %v1190_v16 = vpop.f32.mrb[16].mxu0  ;;  %v1684_v44 = vpack.c.bf16 %v613_v15, %v612_v41 }
  0xf8   :  { %v615_v45 = vmax.f32 %v485_v42, %v583_v37  ;;  %v495_v50 = vadd.f32 %v1190_v16, %v1630_v6  ;;  %v489_v18 = vpop.f32.mrb[17].mxu0 }
  0xf9   :  { %v614_v49 = vmax.f32 %v480_v36, %v582_v39  ;;  %v490_v46 = vadd.f32 %v489_v18, %v1625_v3 }
  0xfa   :  { %v585_v17 = vmul.f32 0.1, %v495_v50 }
  0xfb   :  { %v584_v47 = vmul.f32 0.1, %v490_v46  ;;  %v1193_v21 = vpop.f32.mrb[18].mxu0  ;;  %v1690_v48 = vpack.c.bf16 %v615_v45, %v614_v49 }
  0xfc   :  { %v505_v58 = vadd.f32 %v1193_v21, %v1632_v7  ;;  %v499_v51 = vpop.f32.mrb[19].mxu0  ;;  %v617_v57 = vmax.f32 %v495_v50, %v585_v17 }
  0xfd   :  { %v500_v52 = vadd.f32 %v499_v51, %v1634_v9  ;;  %v616_v6 = vmax.f32 %v490_v46, %v584_v47 }
  0xfe   :  { %v587_v53 = vmul.f32 0.1, %v505_v58 }
  0xff   :  { %v586_v26 = vmul.f32 0.1, %v500_v52  ;;  %v1196_v25 = vpop.f32.mrb[20].mxu0  ;;  %v1247_v3 = vpack.c.bf16 %v617_v57, %v616_v6 }
 0x100   :  { %v619_v56 = vmax.f32 %v505_v58, %v587_v53  ;;  %v515_v59 = vadd.f32 %v1196_v25, %v1636_v13  ;;  %v509_v28 = vpop.f32.mrb[21].mxu0  ;;  %v639_v25 = vld [vmem:[%s1833_s2 + $0x50] sm:$0xff] }
 0x101   :  { %v618_v60 = vmax.f32 %v500_v52, %v586_v26  ;;  %v510_v1 = vadd.f32 %v509_v28, %v1638_v14  ;;  %1248 = vmatprep.subr.bf16.mxu1 %v1247_v3  ;;  %v638_v3 = vld [vmem:[%s1833_s2 + $0x48] sm:$0xff]  ;;  %v643_v28 = vld [vmem:[%s1833_s2 + $0x80] sm:$0xff] }
 0x102   :  { %v589_v0 = vmul.f32 0.1, %v515_v59  ;;  %1250 = vmatpush3.bf16.msra.mxu1 %v1652_v55 }
 0x103   :  { %v588_v7 = vmul.f32 0.1, %v510_v1  ;;  %v1199_v34 = vpop.f32.mrb[22].mxu0  ;;  %v1251_v33 = vpack.c.bf16 %v619_v56, %v618_v60  ;;  %v641_v56 = vld [vmem:[%s1833_s2 + $0x68] sm:$0xff]  ;;  %v642_v60 = vld [vmem:[%s1833_s2 + $0x78] sm:$0xff] }
 0x104   :  { %v621_v9 = vmax.f32 %v515_v59, %v589_v0  ;;  %v525_v63 = vadd.f32 %v1199_v34, %v1640_v19  ;;  %v519_v38 = vpop.f32.mrb[23].mxu0  ;;  %v640_v59 = vld [vmem:[%s1833_s2 + $0x60] sm:$0xff]  ;;  %v644_v0 = vld [vmem:[%s1833_s2 + $0x90] sm:$0xff]  ;;  %v646_v34 = vld [vmem:[%s1833_s2 + $0xa8] sm:$0xff] }
 0x105   :  { %v620_v4 = vmax.f32 %v510_v1, %v588_v7  ;;  %v520_v5 = vadd.f32 %v519_v38, %v1642_v20  ;;  %1252 = vmatprep.subr.bf16.mxu1 %v1251_v33  ;;  %v645_v1 = vld [vmem:[%s1833_s2 + $0x98] sm:$0xff]  ;;  %v647_v7 = vld [vmem:[%s1833_s2 + $0xb0] sm:$0xff]  ;;  %v649_v33 = vld [vmem:[%s1833_s2 + $0xc8] sm:$0xff] }
 0x106   :  { %v591_v13 = vmul.f32 0.1, %v525_v63  ;;  %1254 = vmatpush3.bf16.msra.mxu1 %v1660_v12  ;;  %v650_v38 = vld [vmem:[%s1833_s2 + $0xd8] sm:$0xff] }
 0x107   :  { %v590_v11 = vmul.f32 0.1, %v520_v5  ;;  %v1202_v14 = vpop.f32.mrb[24].mxu0  ;;  %v1255_v31 = vpack.c.bf16 %v621_v9, %v620_v4  ;;  %v648_v9 = vld [vmem:[%s1833_s2 + $0xc0] sm:$0xff]  ;;  %v653_v4 = vld [vmem:[%s1833_s2 + $0xf8] sm:$0xff] }
 0x108   :  { %v623_v43 = vmax.f32 %v525_v63, %v591_v13  ;;  %v535_v55 = vadd.f32 %v1202_v14, %v1644_v23  ;;  %v529_v32 = vpop.f32.mrb[25].mxu0  ;;  %v651_v63 = vld [vmem:[%s1833_s2 + $0xe0] sm:$0xff]  ;;  %v655_v13 = vld [vmem:[%s1833_s2 + $0x110] sm:$0xff]  ;;  %v657_v14 = vld [vmem:[%s1833_s2 + $0x128] sm:$0xff] }
 0x109   :  { %v622_v15 = vmax.f32 %v520_v5, %v590_v11  ;;  %v530_v42 = vadd.f32 %v529_v32, %v1646_v24  ;;  %1256 = vmatprep.subr.bf16.mxu1 %v1255_v31  ;;  %v652_v5 = vld [vmem:[%s1833_s2 + $0xf0] sm:$0xff]  ;;  %v654_v11 = vld [vmem:[%s1833_s2 + $0x108] sm:$0xff]  ;;  %v656_v31 = vld [vmem:[%s1833_s2 + $0x120] sm:$0xff] }
 0x10a   :  { %v593_v19 = vmul.f32 0.1, %v535_v55  ;;  %1258 = vmatpush3.bf16.msra.mxu1 %v1664_v40  ;;  %v661_v32 = vld [vmem:[%s1833_s2 + $0x158] sm:$0xff] }
 0x10b   :  { %v592_v35 = vmul.f32 0.1, %v530_v42  ;;  %v1205_v20 = vpop.f32.mrb[26].mxu0  ;;  %v1259_v41 = vpack.c.bf16 %v623_v43, %v622_v15  ;;  %v659_v43 = vld [vmem:[%s1833_s2 + $0x140] sm:$0xff]  ;;  %v660_v15 = vld [vmem:[%s1833_s2 + $0x150] sm:$0xff] }
 0x10c   :  { %v625_v36 = vmax.f32 %v535_v55, %v593_v19  ;;  %v545_v12 = vadd.f32 %v1205_v20, %v1648_v29  ;;  %v539_v37 = vpop.f32.mrb[27].mxu0  ;;  %v658_v55 = vld [vmem:[%s1833_s2 + $0x138] sm:$0xff]  ;;  %v662_v19 = vld [vmem:[%s1833_s2 + $0x168] sm:$0xff]  ;;  %v1323_v20 = vmov 0.0  }
 0x10d   :  { %v624_v39 = vmax.f32 %v530_v42, %v592_v35  ;;  %v540_v16 = vadd.f32 %v539_v37, %v1650_v30  ;;  %1260 = vmatprep.subr.bf16.mxu1 %v1259_v41  ;;  %v663_v42 = vld [vmem:[%s1833_s2 + $0x170] sm:$0xff]  ;;  %v1321_v35 = vmov 0.0|0.0   ;;  %1244 = vmatprep.mubr.msk.f32.mxu0 %vm1322_vm2, %v1323_v20  ;;  %v1324_v41 = vmov 2  }
 0x10e   :  { %v595_v23 = vmul.f32 0.1, %v545_v12  ;;  %1262 = vmatpush3.bf16.msra.mxu1 %v1668_v22  ;;  %1279 = vmatprep.subr.bf16.mxu0 %v1321_v35 }
 0x10f   :  { %v594_v45 = vmul.f32 0.1, %v540_v16  ;;  %v1208_v24 = vpop.f32.mrb[28].mxu0  ;;  %v1263_v50 = vpack.c.bf16 %v625_v36, %v624_v39  ;;  %1313 = vset.pattern.permute.xlu1 %v1324_v41  ;;  %1314 = vset.pattern.permute.xlu0 %v1324_v41 }
 0x110   :  { %v627_v18 = vmax.f32 %v545_v12, %v595_v23  ;;  %v555_v40 = vadd.f32 %v1208_v24, %v1656_v61  ;;  %v549_v49 = vpop.f32.mrb[29].mxu0  ;;  %907 = vperm.xlu1 %1313, %v1377_v8   ;;  %v666_v12 = vpop.permute.xlu0 %665 }
 0x111   :  { %v626_v46 = vmax.f32 %v540_v16, %v594_v45  ;;  %v550_v17 = vadd.f32 %v549_v49, %v1658_v2  ;;  %1264 = vmatprep.subr.bf16.mxu1 %v1263_v50  ;;  %v670_v16 = vpop.permute.xlu1 %669 }
 0x112   :  { %v597_v29 = vmul.f32 0.1, %v555_v40  ;;  %1266 = vmatpush3.bf16.msra.mxu1 %v1676_v62 }
 0x113   :  { %v596_v47 = vmul.f32 0.1, %v550_v17  ;;  %v1211_v30 = vpop.f32.mrb[30].mxu0  ;;  %v1267_v21 = vpack.c.bf16 %v627_v18, %v626_v46 }
 0x114   :  { %v629_v58 = vmax.f32 %v555_v40, %v597_v29  ;;  %v565_v22 = vadd.f32 %v1211_v30, %v1672_v54  ;;  %v559_v51 = vpop.f32.mrb[31].mxu0  ;;  %v632_v54 = vld [vmem:[%s1833_s2] sm:$0xff] }
 0x115   :  { %v628_v57 = vmax.f32 %v550_v17, %v596_v47  ;;  %v560_v52 = vadd.f32 %v559_v51, %v1674_v27  ;;  %1268 = vmatprep.subr.bf16.mxu1 %v1267_v21  ;;  %v635_v27 = vld [vmem:[%s1833_s2 + $0x20] sm:$0xff]  ;;  %v674_v46 = vpop.permute.xlu1 %673 }
 0x116   :  { %v599_v61 = vmul.f32 0.1, %v565_v22  ;;  %1270 = vmatpush3.bf16.msra.mxu1 %v1680_v10  ;;  %v634_v10 = vld [vmem:[%s1833_s2 + $0x18] sm:$0xff] }
 0x117   :  { %v598_v6 = vmul.f32 0.1, %v560_v52  ;;  %v1271_v2 = vpack.c.bf16 %v629_v58, %v628_v57 }
 0x118   :  { %v631_v53 = vmax.f32 %v565_v22, %v599_v61 }
 0x119   :  { %v630_v26 = vmax.f32 %v560_v52, %v598_v6  ;;  %1272 = vmatprep.subr.bf16.mxu1 %v1271_v2  ;;  %v678_v52 = vpop.permute.xlu0 %677 }
 0x11a   :  { %1274 = vmatpush3.bf16.msra.mxu1 %v1684_v44  ;;  %v637_v44 = vld [vmem:[%s1833_s2 + $0x38] sm:$0xff] }
 0x11b   :  { %v1275_v62 = vpack.c.bf16 %v631_v53, %v630_v26 }
 0x11d   :  { %1276 = vmatprep.subr.bf16.mxu1 %v1275_v62 }
 0x11e   :  { %1278 = vmatpush3.bf16.msra.mxu1 %v1690_v48  ;;  %v636_v48 = vld [vmem:[%s1833_s2 + $0x30] sm:$0xff] }
 0x121   :  { %793 = vmatmul.mubr.f32.vlgmr.msra.gmra.mrb[0].mxu1 %v632_v54  ;;  %v682_v54 = vpop.permute.xlu1 %681 }
 0x122   :  { %797 = vmatprep.mubr.f32.mxu1 %v635_v27 }
 0x125   :  { %798 = vmatmul.mubr.f32.gmra.mrb[2].mxu1 %v634_v10 }
 0x126   :  { %802 = vmatprep.mubr.f32.mxu1 %v637_v44 }
 0x129   :  { %803 = vmatmul.mubr.f32.gmra.mrb[4].mxu1 %v636_v48 }
 0x12a   :  { %807 = vmatprep.mubr.f32.mxu1 %v639_v25 }
 0x12d   :  { %808 = vmatmul.mubr.f32.gmra.mrb[6].mxu1 %v638_v3 }
 0x12e   :  { %812 = vmatprep.mubr.f32.mxu1 %v641_v56 }
 0x131   :  { %813 = vmatmul.mubr.f32.gmra.mrb[8].mxu1 %v640_v59  ;;  %v686_v59 = vpop.permute.xlu0 %685 }
 0x132   :  { %817 = vmatprep.mubr.f32.mxu1 %v643_v28 }
 0x135   :  { %818 = vmatmul.mubr.f32.gmra.mrb[10].mxu1 %v642_v60 }
 0x136   :  { %822 = vmatprep.mubr.f32.mxu1 %v645_v1 }
 0x139   :  { %823 = vmatmul.mubr.f32.gmra.mrb[12].mxu1 %v644_v0 }
 0x13a   :  { %827 = vmatprep.mubr.f32.mxu1 %v647_v7 }
 0x13d   :  { %828 = vmatmul.mubr.f32.gmra.mrb[14].mxu1 %v646_v34 }
 0x13e   :  { %832 = vmatprep.mubr.f32.mxu1 %v649_v33  ;;  %v690_v33 = vpop.permute.xlu1 %689 }
 0x141   :  { %833 = vmatmul.mubr.f32.gmra.mrb[16].mxu1 %v648_v9 }
 0x142   :  { %837 = vmatprep.mubr.f32.mxu1 %v651_v63 }
 0x145   :  { %838 = vmatmul.mubr.f32.gmra.mrb[18].mxu1 %v650_v38 }
 0x146   :  { %842 = vmatprep.mubr.f32.mxu1 %v653_v4 }
 0x149   :  { %843 = vmatmul.mubr.f32.gmra.mrb[20].mxu1 %v652_v5 }
 0x14a   :  { %847 = vmatprep.mubr.f32.mxu1 %v655_v13 }
 0x14d   :  { %848 = vmatmul.mubr.f32.gmra.mrb[22].mxu1 %v654_v11 }
 0x14e   :  { %852 = vmatprep.mubr.f32.mxu1 %v657_v14  ;;  %v694_v14 = vpop.permute.xlu0 %693 }
 0x151   :  { %853 = vmatmul.mubr.f32.gmra.mrb[24].mxu1 %v656_v31 }
 0x152   :  { %857 = vmatprep.mubr.f32.mxu1 %v659_v43 }
 0x155   :  { %858 = vmatmul.mubr.f32.gmra.mrb[26].mxu1 %v658_v55 }
 0x156   :  { %862 = vmatprep.mubr.f32.mxu1 %v661_v32 }
 0x159   :  { %863 = vmatmul.mubr.f32.gmra.mrb[28].mxu1 %v660_v15 }
 0x15a   :  { %867 = vmatprep.mubr.f32.mxu1 %v663_v42 }
 0x15d   :  { %868 = vmatmul.mubr.f32.gmra.mrb[30].mxu1 %v662_v19  ;;  %v698_v19 = vpop.permute.xlu1 %697 }
 0x1f4   :  { %v1097_v36 = vpop.f32.mrb[0].mxu1 }
 0x1f5   :  { %v1098_v37 = vpop.f32.mrb[1].mxu1 }
 0x1f6   :  { %v1099_v39 = vadd.f32 %v1098_v37, %v1097_v36 }
 0x1f8   :  { %v795_v23 = vadd.f32 %v1099_v39, %v666_v12  ;;  %v1100_v45 = vpop.f32.mrb[2].mxu1 }
 0x1f9   :  { %v1101_v24 = vpop.f32.mrb[3].mxu1 }
 0x1fa   :  { %v1102_v50 = vadd.f32 %v1101_v24, %v1100_v45  ;;  %v873_v18 = vmul.f32 0.1, %v795_v23 }
 0x1fc   :  { %v800_v40 = vadd.f32 %v1102_v50, %v670_v16  ;;  %v1103_v49 = vpop.f32.mrb[4].mxu1  ;;  %v889_v30 = vmax.f32 %v795_v23, %v873_v18  ;;  %v702_v23 = vpop.permute.xlu0 %701 }
 0x1fd   :  { %v1104_v17 = vpop.f32.mrb[5].mxu1 }
 0x1fe   :  { %v874_v29 = vmul.f32 0.1, %v800_v40  ;;  %v1105_v47 = vadd.f32 %v1104_v17, %v1103_v49 }
 0x200   :  { %v890_v21 = vmax.f32 %v800_v40, %v874_v29  ;;  %v805_v58 = vadd.f32 %v1105_v47, %v674_v46  ;;  %v1106_v8 = vpop.f32.mrb[6].mxu1  ;;  %v706_v46 = vpop.permute.xlu1 %705 }
 0x201   :  { %v1107_v22 = vpop.f32.mrb[7].mxu1 }
 0x202   :  { %v1280_v51 = vpack.c.bf16 %v890_v21, %v889_v30  ;;  %v1108_v57 = vadd.f32 %v1107_v22, %v1106_v8  ;;  %v875_v61 = vmul.f32 0.1, %v805_v58  ;;  %v710_v22 = vpop.permute.xlu0 %709 }
 0x204   :  { %v810_v6 = vadd.f32 %v1108_v57, %v678_v52  ;;  %v1109_v2 = vpop.f32.mrb[8].mxu1  ;;  %1281 = vmatpush3.bf16.msra.mxu0 %v1280_v51  ;;  %v891_v27 = vmax.f32 %v805_v58, %v875_v61 }
 0x205   :  { %v1110_v53 = vpop.f32.mrb[9].mxu1  ;;  %1282 = vmatprep.subr.bf16.mxu0 %v1321_v35 }
 0x206   :  { %v876_v26 = vmul.f32 0.1, %v810_v6  ;;  %v1111_v62 = vadd.f32 %v1110_v53, %v1109_v2  ;;  %v714_v53 = vpop.permute.xlu1 %713 }
 0x208   :  { %v892_v10 = vmax.f32 %v810_v6, %v876_v26  ;;  %v815_v44 = vadd.f32 %v1111_v62, %v682_v54  ;;  %v1112_v48 = vpop.f32.mrb[10].mxu1 }
 0x209   :  { %v1113_v25 = vpop.f32.mrb[11].mxu1 }
 0x20a   :  { %v1283_v3 = vpack.c.bf16 %v892_v10, %v891_v27  ;;  %v1114_v56 = vadd.f32 %v1113_v25, %v1112_v48  ;;  %v877_v28 = vmul.f32 0.1, %v815_v44  ;;  %v718_v25 = vpop.permute.xlu0 %717 }
 0x20c   :  { %v820_v60 = vadd.f32 %v1114_v56, %v686_v59  ;;  %v1115_v1 = vpop.f32.mrb[12].mxu1  ;;  %1284 = vmatpush3.bf16.msra.mxu0 %v1283_v3  ;;  %v893_v9 = vmax.f32 %v815_v44, %v877_v28 }
 0x20d   :  { %v1116_v0 = vpop.f32.mrb[13].mxu1  ;;  %1285 = vmatprep.subr.bf16.mxu0 %v1321_v35 }
 0x20e   :  { %v878_v7 = vmul.f32 0.1, %v820_v60  ;;  %v1117_v34 = vadd.f32 %v1116_v0, %v1115_v1  ;;  %v722_v0 = vpop.permute.xlu1 %721 }
 0x210   :  { %v894_v63 = vmax.f32 %v820_v60, %v878_v7  ;;  %v825_v38 = vadd.f32 %v1117_v34, %v690_v33  ;;  %v1118_v4 = vpop.f32.mrb[14].mxu1 }
 0x211   :  { %v1119_v5 = vpop.f32.mrb[15].mxu1 }
 0x212   :  { %v1286_v13 = vpack.c.bf16 %v894_v63, %v893_v9  ;;  %v1120_v11 = vadd.f32 %v1119_v5, %v1118_v4  ;;  %v879_v31 = vmul.f32 0.1, %v825_v38  ;;  %v726_v5 = vpop.permute.xlu0 %725 }
 0x214   :  { %v830_v43 = vadd.f32 %v1120_v11, %v694_v14  ;;  %v1121_v55 = vpop.f32.mrb[16].mxu1  ;;  %1287 = vmatpush3.bf16.msra.mxu0 %v1286_v13  ;;  %v895_v20 = vmax.f32 %v825_v38, %v879_v31 }
 0x215   :  { %v1122_v32 = vpop.f32.mrb[17].mxu1  ;;  %1288 = vmatprep.subr.bf16.mxu0 %v1321_v35 }
 0x216   :  { %v880_v15 = vmul.f32 0.1, %v830_v43  ;;  %v1123_v42 = vadd.f32 %v1122_v32, %v1121_v55  ;;  %v905_v32 = vld [vmem:[%s1833_s2 + $0x10] sm:$0xff] }
 0x218   :  { %v896_v41 = vmax.f32 %v830_v43, %v880_v15  ;;  %v835_v36 = vadd.f32 %v1123_v42, %v698_v19  ;;  %v1124_v12 = vpop.f32.mrb[18].mxu1  ;;  %v908_v15 = vpop.permute.xlu1 %907 }
 0x219   :  { %v1125_v37 = vpop.f32.mrb[19].mxu1 }
 0x21a   :  { %v1289_v39 = vpack.c.bf16 %v896_v41, %v895_v20  ;;  %v1126_v16 = vadd.f32 %v1125_v37, %v1124_v12  ;;  %v881_v45 = vmul.f32 0.1, %v835_v36 }
 0x21c   :  { %v840_v24 = vadd.f32 %v1126_v16, %v702_v23  ;;  %v1127_v50 = vpop.f32.mrb[20].mxu1  ;;  %1290 = vmatpush3.bf16.msra.mxu0 %v1289_v39  ;;  %v897_v17 = vmax.f32 %v835_v36, %v881_v45 }
 0x21d   :  { %v1128_v18 = vpop.f32.mrb[21].mxu1  ;;  %1291 = vmatprep.subr.bf16.mxu0 %v1321_v35 }
 0x21e   :  { %v882_v40 = vmul.f32 0.1, %v840_v24  ;;  %v1129_v49 = vadd.f32 %v1128_v18, %v1127_v50 }
 0x220   :  { %v898_v29 = vmax.f32 %v840_v24, %v882_v40  ;;  %v845_v47 = vadd.f32 %v1129_v49, %v706_v46  ;;  %v1130_v30 = vpop.f32.mrb[22].mxu1 }
 0x221   :  { %v1131_v21 = vpop.f32.mrb[23].mxu1 }
 0x222   :  { %v1292_v58 = vpack.c.bf16 %v898_v29, %v897_v17  ;;  %v1132_v8 = vadd.f32 %v1131_v21, %v1130_v30  ;;  %v883_v51 = vmul.f32 0.1, %v845_v47 }
 0x224   :  { %v850_v57 = vadd.f32 %v1132_v8, %v710_v22  ;;  %v1133_v52 = vpop.f32.mrb[24].mxu1  ;;  %1293 = vmatpush3.bf16.msra.mxu0 %v1292_v58  ;;  %v899_v26 = vmax.f32 %v845_v47, %v883_v51 }
 0x225   :  { %v1134_v61 = vpop.f32.mrb[25].mxu1  ;;  %1294 = vmatprep.subr.bf16.mxu0 %v1321_v35 }
 0x226   :  { %v884_v6 = vmul.f32 0.1, %v850_v57  ;;  %v1135_v2 = vadd.f32 %v1134_v61, %v1133_v52 }
 0x228   :  { %v900_v62 = vmax.f32 %v850_v57, %v884_v6  ;;  %v855_v54 = vadd.f32 %v1135_v2, %v714_v53  ;;  %v1136_v27 = vpop.f32.mrb[26].mxu1 }
 0x229   :  { %v1137_v10 = vpop.f32.mrb[27].mxu1 }
 0x22a   :  { %v1295_v44 = vpack.c.bf16 %v900_v62, %v899_v26  ;;  %v1138_v48 = vadd.f32 %v1137_v10, %v1136_v27  ;;  %v885_v3 = vmul.f32 0.1, %v855_v54 }
 0x22c   :  { %v860_v56 = vadd.f32 %v1138_v48, %v718_v25  ;;  %v1139_v59 = vpop.f32.mrb[28].mxu1  ;;  %1296 = vmatpush3.bf16.msra.mxu0 %v1295_v44  ;;  %v901_v7 = vmax.f32 %v855_v54, %v885_v3 }
 0x22d   :  { %v1140_v28 = vpop.f32.mrb[29].mxu1  ;;  %1297 = vmatprep.subr.bf16.mxu0 %v1321_v35 }
 0x22e   :  { %v886_v60 = vmul.f32 0.1, %v860_v56  ;;  %v1141_v1 = vadd.f32 %v1140_v28, %v1139_v59 }
 0x230   :  { %v902_v34 = vmax.f32 %v860_v56, %v886_v60  ;;  %v865_v33 = vadd.f32 %v1141_v1, %v722_v0  ;;  %v1142_v9 = vpop.f32.mrb[30].mxu1 }
 0x231   :  { %v1143_v63 = vpop.f32.mrb[31].mxu1 }
 0x232   :  { %v1298_v38 = vpack.c.bf16 %v902_v34, %v901_v7  ;;  %v1144_v4 = vadd.f32 %v1143_v63, %v1142_v9  ;;  %v887_v13 = vmul.f32 0.1, %v865_v33 }
 0x234   :  { %v870_v11 = vadd.f32 %v1144_v4, %v726_v5  ;;  %1299 = vmatpush3.bf16.msra.mxu0 %v1298_v38  ;;  %v903_v31 = vmax.f32 %v865_v33, %v887_v13 }
 0x235   :  { %1300 = vmatprep.subr.bf16.mxu0 %v1321_v35 }
 0x236   :  { %v888_v14 = vmul.f32 0.1, %v870_v11 }
 0x238   :  { %v904_v43 = vmax.f32 %v870_v11, %v888_v14 }
 0x23a   :  { %v1301_v55 = vpack.c.bf16 %v904_v43, %v903_v31 }
 0x23c   :  { %1302 = vmatpush3.bf16.msra.mxu0 %v1301_v55 }
 0x23f   :  { %1245 = vmatmul.mubr.f32.vlgmr.msra.gmra.mrb[32].mxu0 %v905_v32 }
 0x312   :  { %v976_v42 = vpop.f32.mrb[32].mxu0 }
 0x313   :  { %v977_v19 = vadd.f32 %v976_v42, %v908_v15  ;;  %v1246_v20 = vpop.f32.mrb[33].mxu0 }
 0x315   :  { %v981_v41 = vrot.slane %v977_v19, 7  ;;  %994 = vst.msk [vmem:[%s1834_s4] sm:$0x4] %vm993_vm3, %v977_v19 }
 0x317   :  { %v983_v35 = vsub.f32 %v977_v19, %v981_v41 }
 0x319   :  { %v984_v36 = vmul.f32 1.442695, %v983_v35 }
 0x31b   :  { %1315 = vpow2.f32 %v984_v36 }
 0x325   :  { %v1316_v12 = vpop.eup %1315 }
 0x326   :  { %v986_v37 = vadd.f32 1.0, %v1316_v12 }
 0x328   :  { %1317 = vrcp.f32 %v986_v37 }
 0x332   :  { %v1318_v39 = vpop.eup %1317 }
 0x333   :  { %v989_v16 = vsub.f32 1.0, %v1318_v39  ;;  %991 = vst.msk [vmem:[%s1834_s4 - $0x1] sm:$0x2] %vm990_vm4, %v1318_v39 }
 0x335   :  { %992 = vst.msk [vmem:[%s1834_s4] sm:$0x2] %vm990_vm4, %v989_v16 }

</bundles_post_ra>
